<compile_context>
chip_gen: v6e
topology: v6e:2x2x1
jax: 0.10.0
libtpu: 0.0.40
codegen_flags: <defaults>
</compile_context>

<pallas_src>
import functools

import jax
import jax.numpy as jnp
from jax.experimental import pallas as pl
from jax.experimental.pallas import tpu as pltpu

_LANE = 128     # vreg lane width
_SUBLANE = 8    # f32 sublane count


def _round_up(n, m):
    return (n + m - 1) // m * m


def qnet_kernel(x_ref, w1_ref, b1_ref, w2_ref, b2_ref, o_ref):
    # Whole tile fits in VMEM: both matmuls, bias adds and ReLU fused.
    x = x_ref[...]                                        # (B, in)
    h = jnp.dot(x, w1_ref[...],
                preferred_element_type=jnp.float32)       # (B, hid_pad) f32
    h = jnp.maximum(h + b1_ref[...], 0.0)                 # bias + ReLU in f32
    y = jnp.dot(h.astype(w2_ref.dtype), w2_ref[...],
                preferred_element_type=jnp.float32)       # (B, out) f32
    o_ref[...] = (y + b2_ref[...]).astype(o_ref.dtype)


def prepare_params(w1, b1, w2, b2, param_dtype=jnp.float32):
    """Convert torch-layout params (out,in)/(out,) to kernel layout ONCE.

    Hoisted out of the per-call forward path (do at init / after optimizer
    steps).  The hidden dim is zero-padded to a 128-lane multiple (free —
    numerics unchanged: padded hidden units have zero weight/bias and hit
    zero rows of w2).  The OUTPUT dim is left unpadded so the kernel's HBM
    writeback moves only real bytes.
    NOTE: param_dtype=jnp.bfloat16 halves activation/param traffic on
    v6e/v7x but will not match an f32 reference to 1e-5.
    """
    hidden, in_size = w1.shape
    out_size = w2.shape[0]
    hid_pad = _round_up(hidden, _LANE)                            # 32 -> 128

    w1_t = jnp.zeros((in_size, hid_pad), param_dtype)
    w1_t = w1_t.at[:, :hidden].set(w1.T.astype(param_dtype))      # (in, hid_pad)
    b1_r = jnp.zeros((1, hid_pad), jnp.float32)
    b1_r = b1_r.at[:, :hidden].set(b1.astype(jnp.float32))        # (1, hid_pad)
    w2_t = jnp.zeros((hid_pad, out_size), param_dtype)
    w2_t = w2_t.at[:hidden, :].set(w2.T.astype(param_dtype))      # (hid_pad, out)
    b2_r = b2.reshape(1, -1).astype(jnp.float32)                  # (1, out)
    return (w1_t, b1_r, w2_t, b2_r), out_size


@functools.partial(jax.jit,
                   static_argnames=("out_size", "max_tile_b", "grid_min_rows"))
def linear_qnet_forward(x, params, out_size, max_tile_b=4096, grid_min_rows=512):
    """x: (B, input_size); params from prepare_params. Returns (B, out_size)."""
    w1_t, b1_r, w2_t, b2_r = params
    B, in_size = x.shape
    out_dtype = x.dtype

    # Cast activations to the param compute dtype (no-op for f32 params).
    x = x.astype(w1_t.dtype)

    # Pad batch to a sublane multiple — padding is free MXU/vreg capacity.
    b_pad = _round_up(B, _SUBLANE)
    if b_pad != B:
        x = jnp.pad(x, ((0, b_pad - B), (0, 0)))

    vmem = pl.BlockSpec(memory_space=pltpu.MemorySpace.VMEM)

    if b_pad <= grid_min_rows:
        # Small batch: single invocation, no grid, whole-array VMEM specs —
        # the problem is entirely launch-overhead bound at this size.
        y = pl.pallas_call(
            qnet_kernel,
            out_shape=jax.ShapeDtypeStruct((b_pad, out_size), out_dtype),
            in_specs=[vmem, vmem, vmem, vmem, vmem],
            out_specs=vmem,
        )(x, w1_t, b1_r, w2_t, b2_r)
    else:
        # Batch-tiled grid.  Derive the tile from B:
        #  * at least 2 (and an even number of) grid steps so the "parallel"
        #    batch axis shards across both TensorCores on v7x,
        #  * tile_b a multiple of 8 (f32 sublane) — required by the BlockSpec,
        #  * padding waste capped at < n_steps * 8 rows (no rounding B up to a
        #    fixed large tile multiple).
        n_steps = max(2, pl.cdiv(b_pad, max_tile_b))
        if n_steps % 2:
            n_steps += 1
        tile_b = _round_up(pl.cdiv(b_pad, n_steps), _SUBLANE)
        assert tile_b % _SUBLANE == 0
        b_total = n_steps * tile_b
        if b_total != x.shape[0]:
            x = jnp.pad(x, ((0, b_total - x.shape[0]), (0, 0)))

        y = pl.pallas_call(
            qnet_kernel,
            out_shape=jax.ShapeDtypeStruct((b_total, out_size), out_dtype),
            grid=(n_steps,),
            in_specs=[
                pl.BlockSpec((tile_b, in_size), lambda i: (i, 0)),
                pl.BlockSpec(w1_t.shape, lambda i: (0, 0)),
                pl.BlockSpec(b1_r.shape, lambda i: (0, 0)),
                pl.BlockSpec(w2_t.shape, lambda i: (0, 0)),
                pl.BlockSpec(b2_r.shape, lambda i: (0, 0)),
            ],
            # Output last dim == out_size (full array dim) -> exempt from the
            # 128-lane rule; no zero-padded HBM writeback, no post-kernel
            # lane slice.
            out_specs=pl.BlockSpec((tile_b, out_size), lambda i: (i, 0)),
            compiler_params=pltpu.CompilerParams(
                dimension_semantics=("parallel",)),
        )(x, w1_t, b1_r, w2_t, b2_r)

    return y[:B, :]


def init_params(key, input_size, hidden_size, output_size):
    """Deterministic init mimicking nn.Linear's default U(-1/sqrt(fan_in), +)."""
    k1, k2, k3, k4 = jax.random.split(key, 4)
    bound1 = 1.0 / (input_size ** 0.5)
    bound2 = 1.0 / (hidden_size ** 0.5)
    w1 = jax.random.uniform(k1, (hidden_size, input_size), jnp.float32,
                            -bound1, bound1)
    b1 = jax.random.uniform(k2, (hidden_size,), jnp.float32, -bound1, bound1)
    w2 = jax.random.uniform(k3, (output_size, hidden_size), jnp.float32,
                            -bound2, bound2)
    b2 = jax.random.uniform(k4, (output_size,), jnp.float32, -bound2, bound2)
    return w1, b1, w2, b2


def _reference(x, w1, b1, w2, b2):
    return jnp.maximum(x @ w1.T + b1, 0.0) @ w2.T + b2


if __name__ == "__main__":
    # Shapes consistent with the module's forward: (batch, input_size).
    batch, input_size, hidden_size, output_size = 2, 11, 32, 3

    key = jax.random.PRNGKey(0)
    kx, kp, kb = jax.random.split(key, 3)
    x = jax.random.normal(kx, (batch, input_size), jnp.float32)
    w1, b1, w2, b2 = init_params(kp, input_size, hidden_size, output_size)

    # Param layout conversion is done ONCE, outside the forward path.
    # (f32 params here so the 1e-5 allclose check against the f32 reference
    # passes; pass param_dtype=jnp.bfloat16 for v6e/v7x throughput.)
    params, out_size = prepare_params(w1, b1, w2, b2)

    # Small-batch (single-invocation, no-grid) path.
    out = linear_qnet_forward(x, params, out_size=out_size)
    out = jax.block_until_ready(out)
    ref = _reference(x, w1, b1, w2, b2)
    assert out.shape == (batch, output_size)
    assert jnp.allclose(out, ref, atol=1e-5, rtol=1e-5)

    # Large-batch (batch-tiled grid, "parallel" batch axis, >=2 grid steps).
    xb = jax.random.normal(kb, (1024, input_size), jnp.float32)
    outb = linear_qnet_forward(xb, params, out_size=out_size)
    outb = jax.block_until_ready(outb)
    refb = _reference(xb, w1, b1, w2, b2)
    assert outb.shape == (1024, output_size)
    assert jnp.allclose(outb, refb, atol=1e-5, rtol=1e-5)

    # Odd-sized batch just over a tile boundary (padding-waste / (8,128) check).
    xo = jax.random.normal(kb, (1030, input_size), jnp.float32)
    outo = jax.block_until_ready(
        linear_qnet_forward(xo, params, out_size=out_size))
    refo = _reference(xo, w1, b1, w2, b2)
    assert outo.shape == (1030, output_size)
    assert jnp.allclose(outo, refo, atol=1e-5, rtol=1e-5)

    print("KERNEL_OK")

    # TODO(synk): Linear_QNet.save() (torch.save of the state dict) is file
    # I/O, not a compute op — no Pallas equivalent; omitted.
</pallas_src>

<mosaic_0001>
module attributes {stable_mosaic.version = 11 : i64} {
  func.func @qnet_kernel(%arg0: memref<8x11xf32, #tpu.memory_space<vmem>>, %arg1: memref<11x128xf32, #tpu.memory_space<vmem>>, %arg2: memref<1x128xf32, #tpu.memory_space<vmem>>, %arg3: memref<128x3xf32, #tpu.memory_space<vmem>>, %arg4: memref<1x3xf32, #tpu.memory_space<vmem>>, %arg5: memref<8x3xf32, #tpu.memory_space<vmem>>) attributes {dimension_semantics = [], scalar_prefetch = 0 : i64, scratch_operands = 0 : i64, tpu.core_type = #tpu.core_type<tc>} {
    %c0 = arith.constant 0 : index
    %c0_0 = arith.constant 0 : index
    %0 = vector.load %arg0[%c0, %c0_0] : memref<8x11xf32, #tpu.memory_space<vmem>>, vector<8x11xf32>
    %c0_1 = arith.constant 0 : index
    %c0_2 = arith.constant 0 : index
    %1 = vector.load %arg1[%c0_1, %c0_2] : memref<11x128xf32, #tpu.memory_space<vmem>>, vector<11x128xf32>
    %cst = arith.constant dense<0.000000e+00> : vector<8x128xf32>
    %2 = tpu.matmul %0, %1, %cst {dimension_numbers = #tpu.dot_dimension_numbers<[1], [0], [0], [1], [0, 0, 1, 1], [], []>} : vector<8x11xf32>, vector<11x128xf32>, vector<8x128xf32> -> vector<8x128xf32>
    %c0_3 = arith.constant 0 : index
    %c0_4 = arith.constant 0 : index
    %3 = vector.load %arg2[%c0_3, %c0_4] : memref<1x128xf32, #tpu.memory_space<vmem>>, vector<1x128xf32>
    %4 = vector.broadcast %3 : vector<1x128xf32> to vector<8x128xf32>
    %5 = arith.addf %2, %4 : vector<8x128xf32>
    %cst_5 = arith.constant 0.000000e+00 : f32
    %6 = vector.broadcast %cst_5 : f32 to vector<8x128xf32>
    %7 = arith.maximumf %5, %6 : vector<8x128xf32>
    %c0_6 = arith.constant 0 : index
    %c0_7 = arith.constant 0 : index
    %8 = vector.load %arg3[%c0_6, %c0_7] : memref<128x3xf32, #tpu.memory_space<vmem>>, vector<128x3xf32>
    %cst_8 = arith.constant dense<0.000000e+00> : vector<8x3xf32>
    %9 = tpu.matmul %7, %8, %cst_8 {dimension_numbers = #tpu.dot_dimension_numbers<[1], [0], [0], [1], [0, 0, 1, 1], [], []>} : vector<8x128xf32>, vector<128x3xf32>, vector<8x3xf32> -> vector<8x3xf32>
    %c0_9 = arith.constant 0 : index
    %c0_10 = arith.constant 0 : index
    %10 = vector.load %arg4[%c0_9, %c0_10] : memref<1x3xf32, #tpu.memory_space<vmem>>, vector<1x3xf32>
    %11 = vector.broadcast %10 : vector<1x3xf32> to vector<8x3xf32>
    %12 = arith.addf %9, %11 : vector<8x3xf32>
    %c0_11 = arith.constant 0 : index
    %c0_12 = arith.constant 0 : index
    %13 = vector.load %arg5[%c0_11, %c0_12] : memref<8x3xf32, #tpu.memory_space<vmem>>, vector<8x3xf32>
    tpu.vector_store %arg5[%c0_11, %c0_12], %12 {strides = array<i32>} : memref<8x3xf32, #tpu.memory_space<vmem>>, vector<8x3xf32>,
    return
  }
}

</mosaic_0001>

<bundles_post_ra>
// kernel: linear_qnet_forward.1
= control target key start
LH: loop header
LB: loop body
LE: loop exit
PB: predicated region body
PF: predicated region fallthrough
CT: control target
= control target key end

     0   :  { %vm34_vm0 = vcmask 1042432   ;;  %v276_v0 = vmov 0.0   ;;  %vm277_vm1 = vmmov 0   ;;  %vm30_vm2 = vcmask 89088   ;;  %s376_s1 = inlined_call_operand.vmem [shape: f32[11,128], index: 1, kind: input, shape index: {}]   ;;  %s377_s0 = inlined_call_operand.vmem [shape: f32[8,11], index: 0, kind: input, shape index: {}]   ;;  %s378_s3 = inlined_call_operand.vmem [shape: f32[128,3], index: 3, kind: input, shape index: {}]   ;;  %s379_s2 = inlined_call_operand.vmem [shape: f32[1,128], index: 2, kind: input, shape index: {}]   ;;  %s380_s4 = inlined_call_operand.vmem [shape: f32[1,3], index: 4, kind: input, shape index: {}]   ;;  %s381_s5 = inlined_call_operand.vmem [shape: f32[8,3], index: 5, kind: output, shape index: {}]  }
   0x1   :  { %232 = vmatprep.subr.mxu0 %v276_v0  ;;  %v22_v1 = vld [vmem:[%s376_s1 + $0x8] sm:$0x7]  ;;  %v21_v2 = vld [vmem:[%s376_s1] sm:$0xff]  ;;  %236 = vmatprep.mubr.msk.f32.mxu0 %vm277_vm1, %v276_v0  ;;  %v124_v4 = vld [vmem:[%s378_s3 + $0x78] sm:$0xff]  ;;  %vm202_vm3 = vcmask 23552  }
   0x2   :  { %233 = vmatpush3.msk.msra.mxu0 %vm34_vm0, %v22_v1  ;;  %v20_v3 = vld [vmem:[%s377_s0] sm:$0xff]  ;;  %239 = vmatprep.subr.mxu1 %v276_v0  ;;  %v123_v5 = vld [vmem:[%s378_s3 + $0x70] sm:$0xff]  ;;  %v122_v6 = vld [vmem:[%s378_s3 + $0x68] sm:$0xff] }
   0x3   :  { %234 = vmatprep.subr.mxu0 %v276_v0  ;;  %240 = vmatpush3.msra.mxu1 %v124_v4  ;;  %v121_v7 = vld [vmem:[%s378_s3 + $0x60] sm:$0xff]  ;;  %v120_v8 = vld [vmem:[%s378_s3 + $0x58] sm:$0xff]  ;;  %v119_v9 = vld [vmem:[%s378_s3 + $0x50] sm:$0xff] }
   0x4   :  { %235 = vmatpush3.msra.mxu0 %v21_v2  ;;  %241 = vmatprep.subr.mxu1 %v276_v0  ;;  %v118_v10 = vld [vmem:[%s378_s3 + $0x48] sm:$0xff]  ;;  %v117_v11 = vld [vmem:[%s378_s3 + $0x40] sm:$0xff]  ;;  %v116_v12 = vld [vmem:[%s378_s3 + $0x38] sm:$0xff] }
   0x5   :  { %237 = vmatmul.mubr.msk.f32.vlgmr.msra.gmra.mxu0 %vm30_vm2, %v20_v3  ;;  %242 = vmatpush3.msra.mxu1 %v123_v5  ;;  %v115_v13 = vld [vmem:[%s378_s3 + $0x30] sm:$0xff]  ;;  %v114_v14 = vld [vmem:[%s378_s3 + $0x28] sm:$0xff]  ;;  %v113_v15 = vld [vmem:[%s378_s3 + $0x20] sm:$0xff] }
   0x6   :  { %243 = vmatprep.subr.mxu1 %v276_v0  ;;  %271 = vmatprep.mubr.msk.f32.mxu1 %vm277_vm1, %v276_v0  ;;  %v112_v16 = vld [vmem:[%s378_s3 + $0x18] sm:$0xff]  ;;  %v111_v17 = vld [vmem:[%s378_s3 + $0x10] sm:$0xff]  ;;  %v110_v18 = vld [vmem:[%s378_s3 + $0x8] sm:$0xff] }
   0x7   :  { %244 = vmatpush3.msra.mxu1 %v122_v6  ;;  %v109_v19 = vld [vmem:[%s378_s3] sm:$0xff] }
   0x8   :  { %245 = vmatprep.subr.mxu1 %v276_v0  ;;  %v208_v20 = vld [vmem:[%s379_s2] ss:$0 sm:$0xff] }
   0x9   :  { %246 = vmatpush3.msra.mxu1 %v121_v7  ;;  %v211_v25 = vld [vmem:[%s380_s4] ss:$0 sm:$0xff] }
   0xa   :  { %247 = vmatprep.subr.mxu1 %v276_v0 }
   0xb   :  { %248 = vmatpush3.msra.mxu1 %v120_v8 }
   0xc   :  { %249 = vmatprep.subr.mxu1 %v276_v0 }
   0xd   :  { %250 = vmatpush3.msra.mxu1 %v119_v9 }
   0xe   :  { %251 = vmatprep.subr.mxu1 %v276_v0 }
   0xf   :  { %252 = vmatpush3.msra.mxu1 %v118_v10 }
  0x10   :  { %253 = vmatprep.subr.mxu1 %v276_v0 }
  0x11   :  { %254 = vmatpush3.msra.mxu1 %v117_v11 }
  0x12   :  { %255 = vmatprep.subr.mxu1 %v276_v0 }
  0x13   :  { %256 = vmatpush3.msra.mxu1 %v116_v12 }
  0x14   :  { %257 = vmatprep.subr.mxu1 %v276_v0 }
  0x15   :  { %258 = vmatpush3.msra.mxu1 %v115_v13 }
  0x16   :  { %259 = vmatprep.subr.mxu1 %v276_v0 }
  0x17   :  { %260 = vmatpush3.msra.mxu1 %v114_v14 }
  0x18   :  { %261 = vmatprep.subr.mxu1 %v276_v0 }
  0x19   :  { %262 = vmatpush3.msra.mxu1 %v113_v15 }
  0x1a   :  { %263 = vmatprep.subr.mxu1 %v276_v0 }
  0x1b   :  { %264 = vmatpush3.msra.mxu1 %v112_v16 }
  0x1c   :  { %265 = vmatprep.subr.mxu1 %v276_v0 }
  0x1d   :  { %266 = vmatpush3.msra.mxu1 %v111_v17 }
  0x1e   :  { %267 = vmatprep.subr.mxu1 %v276_v0 }
  0x1f   :  { %268 = vmatpush3.msra.mxu1 %v110_v18 }
  0x20   :  { %269 = vmatprep.subr.mxu1 %v276_v0 }
  0x21   :  { %270 = vmatpush3.msra.mxu1 %v109_v19 }
  0xc5   :  { %v104_v21 = vpop.f32.mrf.mxu0 }
  0xc6   :  { %v105_v22 = vadd.f32 %v208_v20, %v104_v21 }
  0xc7   :  { %v238_v23 = vpop.f32.mrf.mxu0 }
  0xc8   :  { %v108_v24 = vmax.f32 %v105_v22, 0.0 }
  0xca   :  { %272 = vmatmul.mubr.f32.vlgmr.msra.gmra.mxu1 %v108_v24 }
 0x18a   :  { %v198_v26 = vpop.f32.mrf.mxu1 }
 0x18b   :  { %v199_v27 = vadd.f32 %v211_v25, %v198_v26 }
 0x18c   :  { %v273_v28 = vpop.f32.mrf.mxu1 }
 0x18d   :  { %203 = vst.msk [vmem:[%s381_s5] sm:$0xff] %vm202_vm3, %v199_v27 }

</bundles_post_ra>
